<compile_context>
chip_gen: v5e
topology: v5e:2x2
jax: 0.10.0
libtpu: 0.0.40
codegen_flags: <defaults>
</compile_context>

<pallas_src>
import functools
import math

import jax
import jax.numpy as jnp
from jax.experimental import pallas as pl
from jax.experimental.pallas import tpu as pltpu


def _round_up(x, m):
    return (x + m - 1) // m * m


def _hidden_pad(hidden):
    # Lane-dense padding only pays off for hidden >= 128.  For tiny hiddens
    # the full-extent block is legal (masked stores) and padding would inflate
    # the second GEMM's FLOPs (32 -> 128 is 16x).
    if hidden >= 128 and hidden % 128 != 0:
        return _round_up(hidden, 128)
    return hidden


def _device_kind():
    try:
        return jax.devices()[0].device_kind.lower()
    except Exception:  # noqa: BLE001 - best-effort hardware sniff only
        return ""


def _is_128_deep_mxu(kind):
    # v2-v5 families: 128-deep MXU, no bf16 EUP.  v6e / v7x: 256-deep, bf16 EUP.
    return any(s in kind for s in ("v2", "v3", "v4", "v5"))


def prepare_timestep_embedder_params(w1, b1, w2, b2, *, max_period=1000,
                                     dot_dtype=jnp.float32):
    """Pad / cast the MLP weights ONCE (call at parameter-load time).

    w1: (freq_dim, hidden), w2: (hidden, hidden) -- torch weights transposed,
    so the kernel computes x @ W + b.  `dot_dtype=jnp.bfloat16` is recommended
    on all generations (v5e's MXU is native bf16 too); accumulation is f32.
    When hidden is already lane-aligned and the dtype matches, the weight
    arrays are passed through unchanged (no extra copies per call).
    """
    freq_dim, hidden = w1.shape
    half = freq_dim // 2
    # Odd freq_dim: the reference zero-pads the last embedding column, so that
    # column multiplies the final w1 row by zero -> dropping rows beyond
    # 2*half is exactly equivalent.
    freq2 = 2 * half
    hp = _hidden_pad(hidden)
    dot_dtype = jnp.dtype(dot_dtype)

    def pad2(w, rows, cols):
        w = jnp.asarray(w, dot_dtype)
        if w.shape == (rows, cols):
            return w
        return jnp.zeros((rows, cols), dot_dtype).at[
            :w.shape[0], :w.shape[1]].set(w)

    def pad_bias(b, cols):
        b = jnp.asarray(b, jnp.float32).reshape(1, -1)
        if b.shape[1] == cols:
            return b
        return jnp.zeros((1, cols), jnp.float32).at[:, :b.shape[1]].set(b)

    freqs = jnp.exp(
        -math.log(max_period) * jnp.arange(half, dtype=jnp.float32) / half
    ).reshape(1, half)

    return dict(
        w1=pad2(w1[:freq2], freq2, hp),   # rows [0:half]=cos, [half:2*half]=sin
        b1=pad_bias(b1, hp),
        w2=pad2(w2, hp, hp),
        b2=pad_bias(b2, hp),
        freqs=freqs,
        half=half, hidden=hidden, hp=hp, dot_dtype=dot_dtype,
    )


def _make_kernel(half, split_first_gemm, silu_dtype):
    def kernel(t_ref, freqs_ref, w1_ref, b1_ref, w2_ref, b2_ref, o_ref):
        # --- sinusoidal timestep embedding (per row block) ----------------
        args = t_ref[...] * freqs_ref[...]                 # (bn, half) f32
        cos_e = jnp.cos(args).astype(w1_ref.dtype)
        sin_e = jnp.sin(args).astype(w1_ref.dtype)

        # --- MLP: Linear -> SiLU -> Linear ---------------------------------
        if split_first_gemm:
            # 128-deep MXU (v2-v5): two K=half dots, no lane concat.
            w1 = w1_ref[...]
            h = jnp.dot(cos_e, w1[:half], preferred_element_type=jnp.float32)
            h = h + jnp.dot(sin_e, w1[half:], preferred_element_type=jnp.float32)
        else:
            # 256-deep MXU (v6e/v7x): single fused K=2*half dot.
            emb = jnp.concatenate([cos_e, sin_e], axis=-1)  # (bn, 2*half)
            h = jnp.dot(emb, w1_ref[...], preferred_element_type=jnp.float32)
        h = h + b1_ref[...]                                # f32 bias broadcast

        # SiLU; bf16 on chips with a bf16 EUP (frees the single EUP slot).
        h = h.astype(silu_dtype)
        h = h * jax.nn.sigmoid(h)

        out = jnp.dot(h.astype(w2_ref.dtype), w2_ref[...],
                      preferred_element_type=jnp.float32)
        out = out + b2_ref[...]
        o_ref[...] = out.astype(o_ref.dtype)

    return kernel


def timestep_embedder_apply(t, params, *, block_n=256,
                            out_dtype=jnp.float32, split_first_gemm=None):
    """t: (N,) timesteps (may be fractional). Returns (N, hidden) in out_dtype.

    `params` comes from `prepare_timestep_embedder_params`.  Set
    `out_dtype=jnp.bfloat16` if the consumer takes bf16 (halves writeback).
    """
    half, hidden, hp = params["half"], params["hidden"], params["hp"]
    dot_dtype = params["dot_dtype"]
    freq2 = 2 * half
    n = t.shape[0]

    kind = _device_kind()
    mxu128 = _is_128_deep_mxu(kind)
    if split_first_gemm is None:
        split_first_gemm = mxu128
    bf16_eup = not mxu128
    silu_dtype = (jnp.bfloat16
                  if (dot_dtype == jnp.dtype(jnp.bfloat16) and bf16_eup)
                  else jnp.float32)

    # Row blocking: guarantee >= 2 grid steps so ("parallel",) can shard rows
    # across the two v7x TensorCores; padded rows compute garbage and are
    # sliced away (negligible - at most one extra tiny block).
    n8 = _round_up(max(n, 1), 8)
    bn = min(block_n, max(8, _round_up(pl.cdiv(n8, 2), 8)))
    n_blocks = max(2, pl.cdiv(n8, bn))
    n_pad = bn * n_blocks
    grid = (n_blocks,)

    t_pad = jnp.zeros((n_pad, 1), jnp.float32).at[:n, 0].set(
        t.astype(jnp.float32))

    freqs, w1p, b1p, w2p, b2p = (params["freqs"], params["w1"], params["b1"],
                                 params["w2"], params["b2"])

    wbytes = jnp.dtype(dot_dtype).itemsize
    obytes = jnp.dtype(out_dtype).itemsize

    def _vmem_limit(weight_bufs):
        est = (weight_bufs * (freq2 * hp + hp * hp) * wbytes      # w1, w2
               + weight_bufs * (2 * hp + half) * 4                # b1, b2, freqs
               + 2 * (bn * 4 + bn * hp * obytes))                 # t / out, 2x
        # +4 MiB headroom for Mosaic internal scratch; never claim the whole
        # 64 MiB of a v7x TensorCore.
        return int(min(max(est + (4 << 20), 8 << 20), 48 << 20))

    flops = 2 * n_pad * hp * (freq2 + hp) + 6 * n_pad * hp
    transcendentals = n_pad * (2 * half + hp)          # cos, sin, sigmoid
    bytes_accessed = ((freq2 * hp + hp * hp) * wbytes + (2 * hp + half) * 4
                      + n_pad * 4 + n_pad * hp * obytes)
    cost = pl.CostEstimate(flops=flops, transcendentals=transcendentals,
                           bytes_accessed=bytes_accessed)

    def _run(single_buffer_weights):
        if single_buffer_weights:
            const_spec = functools.partial(pl.BlockSpec,
                                           pipeline_mode=pl.Buffered(1))
            weight_bufs = 1
        else:
            const_spec = pl.BlockSpec
            weight_bufs = 2
        in_specs = [
            pl.BlockSpec((bn, 1), lambda i: (i, 0)),        # t (row block)
            const_spec((1, half), lambda i: (0, 0)),        # freqs (resident)
            const_spec((freq2, hp), lambda i: (0, 0)),      # w1 (resident)
            const_spec((1, hp), lambda i: (0, 0)),          # b1
            const_spec((hp, hp), lambda i: (0, 0)),         # w2 (resident)
            const_spec((1, hp), lambda i: (0, 0)),          # b2
        ]
        return pl.pallas_call(
            _make_kernel(half, split_first_gemm, silu_dtype),
            out_shape=jax.ShapeDtypeStruct((n_pad, hp), out_dtype),
            grid=grid,
            in_specs=in_specs,
            out_specs=pl.BlockSpec((bn, hp), lambda i: (i, 0)),
            compiler_params=pltpu.CompilerParams(
                dimension_semantics=("parallel",),
                vmem_limit_bytes=_vmem_limit(weight_bufs)),
            cost_estimate=cost,
        )(t_pad, freqs, w1p, b1p, w2p, b2p)

    try:
        out = _run(True)       # single-buffer the constant-index weights
    except Exception:          # older jax w/o pipeline_mode=Buffered support
        out = _run(False)

    return out[:n, :hidden]


def timestep_embedder(t, w1, b1, w2, b2, *, max_period=1000,
                      dot_dtype=jnp.float32, block_n=256,
                      out_dtype=jnp.float32):
    """One-shot convenience wrapper (prepares params on every call).

    Prefer `prepare_timestep_embedder_params` + `timestep_embedder_apply` in
    real use so weight padding/casting happens once at parameter load.
    """
    params = prepare_timestep_embedder_params(
        w1, b1, w2, b2, max_period=max_period, dot_dtype=dot_dtype)
    return timestep_embedder_apply(t, params, block_n=block_n,
                                   out_dtype=out_dtype)


def reference_timestep_embedder(t, w1, b1, w2, b2, *, max_period=1000):
    """Pure-JAX reference mirroring the PyTorch forward (f32 everywhere)."""
    freq_dim = w1.shape[0]
    half = freq_dim // 2
    freqs = jnp.exp(-math.log(max_period)
                    * jnp.arange(half, dtype=jnp.float32) / half)
    args = t.astype(jnp.float32)[:, None] * freqs[None]
    emb = jnp.concatenate([jnp.cos(args), jnp.sin(args)], axis=-1)
    h = emb @ w1 + b1
    h = h * jax.nn.sigmoid(h)
    return h @ w2 + b2


if __name__ == "__main__":
    hidden_size = 32
    frequency_embedding_size = 256
    batch = 8

    key = jax.random.PRNGKey(0)
    k_t, k_w1, k_b1, k_w2, k_b2 = jax.random.split(key, 5)

    # Deterministic synthetic parameters (stored as (in, out) = torch W.T).
    w1 = jax.random.normal(k_w1, (frequency_embedding_size, hidden_size),
                           dtype=jnp.float32) * 0.02
    b1 = jax.random.normal(k_b1, (hidden_size,), dtype=jnp.float32) * 0.02
    w2 = jax.random.normal(k_w2, (hidden_size, hidden_size),
                           dtype=jnp.float32) * 0.02
    b2 = jax.random.normal(k_b2, (hidden_size,), dtype=jnp.float32) * 0.02

    # Fractional timesteps, one per batch element.
    t = jax.random.uniform(k_t, (batch,), dtype=jnp.float32,
                           minval=0.0, maxval=1000.0)

    ref = reference_timestep_embedder(t, w1, b1, w2, b2)

    # f32 MXU-operand path: must match the reference tightly.
    params_f32 = prepare_timestep_embedder_params(w1, b1, w2, b2,
                                                  dot_dtype=jnp.float32)
    out = jax.block_until_ready(timestep_embedder_apply(t, params_f32))
    assert out.shape == (batch, hidden_size)
    assert jnp.allclose(out, ref, atol=1e-4, rtol=1e-4), \
        f"f32 max abs err {jnp.max(jnp.abs(out - ref))}"

    # bf16 MXU-operand path (recommended on all generations): relaxed tol.
    params_bf16 = prepare_timestep_embedder_params(w1, b1, w2, b2,
                                                   dot_dtype=jnp.bfloat16)
    out_bf16 = jax.block_until_ready(timestep_embedder_apply(t, params_bf16))
    assert jnp.allclose(out_bf16, ref, atol=5e-3, rtol=5e-2), \
        f"bf16 max abs err {jnp.max(jnp.abs(out_bf16 - ref))}"

    # Convenience one-shot wrapper still works.
    out_once = jax.block_until_ready(timestep_embedder(t, w1, b1, w2, b2))
    assert jnp.allclose(out_once, ref, atol=1e-4, rtol=1e-4)

    print("KERNEL_OK")
</pallas_src>

<mosaic_0001>
module attributes {stable_mosaic.version = 11 : i64} {
  func.func @kernel(%arg0: i32, %arg1: memref<8x1xf32, #tpu.memory_space<vmem>>, %arg2: memref<1x128xf32, #tpu.memory_space<vmem>>, %arg3: memref<256x32xf32, #tpu.memory_space<vmem>>, %arg4: memref<1x32xf32, #tpu.memory_space<vmem>>, %arg5: memref<32x32xf32, #tpu.memory_space<vmem>>, %arg6: memref<1x32xf32, #tpu.memory_space<vmem>>, %arg7: memref<8x32xf32, #tpu.memory_space<vmem>>) attributes {dimension_semantics = [#tpu.dimension_semantics<parallel>], iteration_bounds = array<i64: 2>, scalar_prefetch = 0 : i64, scratch_operands = 0 : i64, tpu.core_type = #tpu.core_type<tc>, window_params = [{transform_indices = @transform_0, window_bounds = array<i64: 8, 1>}, {pipeline_mode = #tpu.pipeline_mode<synchronous>, transform_indices = @transform_1, window_bounds = array<i64: 1, 128>}, {pipeline_mode = #tpu.pipeline_mode<synchronous>, transform_indices = @transform_2, window_bounds = array<i64: 256, 32>}, {pipeline_mode = #tpu.pipeline_mode<synchronous>, transform_indices = @transform_3, window_bounds = array<i64: 1, 32>}, {pipeline_mode = #tpu.pipeline_mode<synchronous>, transform_indices = @transform_4, window_bounds = array<i64: 32, 32>}, {pipeline_mode = #tpu.pipeline_mode<synchronous>, transform_indices = @transform_5, window_bounds = array<i64: 1, 32>}, {transform_indices = @transform_6, window_bounds = array<i64: 8, 32>}]} {
    %c0 = arith.constant 0 : index
    %c0_0 = arith.constant 0 : index
    %0 = vector.load %arg1[%c0, %c0_0] : memref<8x1xf32, #tpu.memory_space<vmem>>, vector<8x1xf32>
    %c0_1 = arith.constant 0 : index
    %c0_2 = arith.constant 0 : index
    %1 = vector.load %arg2[%c0_1, %c0_2] : memref<1x128xf32, #tpu.memory_space<vmem>>, vector<1x128xf32>
    %2 = vector.broadcast %0 : vector<8x1xf32> to vector<8x128xf32>
    %3 = vector.broadcast %1 : vector<1x128xf32> to vector<8x128xf32>
    %4 = arith.mulf %2, %3 : vector<8x128xf32>
    %5 = math.cos %4 : vector<8x128xf32>
    %6 = math.sin %4 : vector<8x128xf32>
    %7 = tpu.concatenate %5, %6 in 1 : vector<8x128xf32>, vector<8x128xf32> -> vector<8x256xf32>
    %c0_3 = arith.constant 0 : index
    %c0_4 = arith.constant 0 : index
    %8 = vector.load %arg3[%c0_3, %c0_4] : memref<256x32xf32, #tpu.memory_space<vmem>>, vector<256x32xf32>
    %cst = arith.constant dense<0.000000e+00> : vector<8x32xf32>
    %9 = tpu.matmul %7, %8, %cst {dimension_numbers = #tpu.dot_dimension_numbers<[1], [0], [0], [1], [0, 0, 1, 1], [], []>} : vector<8x256xf32>, vector<256x32xf32>, vector<8x32xf32> -> vector<8x32xf32>
    %c0_5 = arith.constant 0 : index
    %c0_6 = arith.constant 0 : index
    %10 = vector.load %arg4[%c0_5, %c0_6] : memref<1x32xf32, #tpu.memory_space<vmem>>, vector<1x32xf32>
    %11 = vector.broadcast %10 : vector<1x32xf32> to vector<8x32xf32>
    %12 = arith.addf %9, %11 : vector<8x32xf32>
    %13 = arith.negf %12 : vector<8x32xf32>
    %14 = math.exp %13 : vector<8x32xf32>
    %cst_7 = arith.constant 1.000000e+00 : f32
    %15 = vector.broadcast %cst_7 : f32 to vector<8x32xf32>
    %16 = arith.addf %15, %14 : vector<8x32xf32>
    %17 = arith.divf %15, %16 : vector<8x32xf32>
    %18 = arith.mulf %12, %17 : vector<8x32xf32>
    %c0_8 = arith.constant 0 : index
    %c0_9 = arith.constant 0 : index
    %19 = vector.load %arg5[%c0_8, %c0_9] : memref<32x32xf32, #tpu.memory_space<vmem>>, vector<32x32xf32>
    %cst_10 = arith.constant dense<0.000000e+00> : vector<8x32xf32>
    %20 = tpu.matmul %18, %19, %cst_10 {dimension_numbers = #tpu.dot_dimension_numbers<[1], [0], [0], [1], [0, 0, 1, 1], [], []>} : vector<8x32xf32>, vector<32x32xf32>, vector<8x32xf32> -> vector<8x32xf32>
    %c0_11 = arith.constant 0 : index
    %c0_12 = arith.constant 0 : index
    %21 = vector.load %arg6[%c0_11, %c0_12] : memref<1x32xf32, #tpu.memory_space<vmem>>, vector<1x32xf32>
    %22 = vector.broadcast %21 : vector<1x32xf32> to vector<8x32xf32>
    %23 = arith.addf %20, %22 : vector<8x32xf32>
    %c0_13 = arith.constant 0 : index
    %c0_14 = arith.constant 0 : index
    %24 = vector.load %arg7[%c0_13, %c0_14] : memref<8x32xf32, #tpu.memory_space<vmem>>, vector<8x32xf32>
    tpu.vector_store %arg7[%c0_13, %c0_14], %23 {strides = array<i32>} : memref<8x32xf32, #tpu.memory_space<vmem>>, vector<8x32xf32>,
    return
  }
  func.func @transform_0(%arg0: i32) -> (i32, i32) {
    %c0_i32 = arith.constant 0 : i32
    %c0_i32_0 = arith.constant 0 : i32
    return %arg0, %c0_i32 : i32, i32
  }
  func.func @transform_1(%arg0: i32) -> (i32, i32) {
    %c0_i32 = arith.constant 0 : i32
    %c0_i32_0 = arith.constant 0 : i32
    %c0_i32_1 = arith.constant 0 : i32
    return %c0_i32, %c0_i32_0 : i32, i32
  }
  func.func @transform_2(%arg0: i32) -> (i32, i32) {
    %c0_i32 = arith.constant 0 : i32
    %c0_i32_0 = arith.constant 0 : i32
    %c0_i32_1 = arith.constant 0 : i32
    return %c0_i32, %c0_i32_0 : i32, i32
  }
  func.func @transform_3(%arg0: i32) -> (i32, i32) {
    %c0_i32 = arith.constant 0 : i32
    %c0_i32_0 = arith.constant 0 : i32
    %c0_i32_1 = arith.constant 0 : i32
    return %c0_i32, %c0_i32_0 : i32, i32
  }
  func.func @transform_4(%arg0: i32) -> (i32, i32) {
    %c0_i32 = arith.constant 0 : i32
    %c0_i32_0 = arith.constant 0 : i32
    %c0_i32_1 = arith.constant 0 : i32
    return %c0_i32, %c0_i32_0 : i32, i32
  }
  func.func @transform_5(%arg0: i32) -> (i32, i32) {
    %c0_i32 = arith.constant 0 : i32
    %c0_i32_0 = arith.constant 0 : i32
    %c0_i32_1 = arith.constant 0 : i32
    return %c0_i32, %c0_i32_0 : i32, i32
  }
  func.func @transform_6(%arg0: i32) -> (i32, i32) {
    %c0_i32 = arith.constant 0 : i32
    %c0_i32_0 = arith.constant 0 : i32
    return %arg0, %c0_i32 : i32, i32
  }
}

module attributes {stable_mosaic.version = 11 : i64} {
  func.func @kernel(%arg0: i32, %arg1: memref<8x1xf32, #tpu.memory_space<vmem>>, %arg2: memref<1x128xf32, #tpu.memory_space<vmem>>, %arg3: memref<256x32xf32, #tpu.memory_space<vmem>>, %arg4: memref<1x32xf32, #tpu.memory_space<vmem>>, %arg5: memref<32x32xf32, #tpu.memory_space<vmem>>, %arg6: memref<1x32xf32, #tpu.memory_space<vmem>>, %arg7: memref<8x32xf32, #tpu.memory_space<vmem>>) attributes {dimension_semantics = [#tpu.dimension_semantics<parallel>], iteration_bounds = array<i64: 2>, scalar_prefetch = 0 : i64, scratch_operands = 0 : i64, tpu.core_type = #tpu.core_type<tc>, window_params = [{transform_indices = @transform_0, window_bounds = array<i64: 8, 1>}, {pipeline_mode = #tpu.pipeline_mode<synchronous>, transform_indices = @transform_1, window_bounds = array<i64: 1, 128>}, {pipeline_mode = #tpu.pipeline_mode<synchronous>, transform_indices = @transform_2, window_bounds = array<i64: 256, 32>}, {pipeline_mode = #tpu.pipeline_mode<synchronous>, transform_indices = @transform_3, window_bounds = array<i64: 1, 32>}, {pipeline_mode = #tpu.pipeline_mode<synchronous>, transform_indices = @transform_4, window_bounds = array<i64: 32, 32>}, {pipeline_mode = #tpu.pipeline_mode<synchronous>, transform_indices = @transform_5, window_bounds = array<i64: 1, 32>}, {transform_indices = @transform_6, window_bounds = array<i64: 8, 32>}]} {
    %c0 = arith.constant 0 : index
    %c0_0 = arith.constant 0 : index
    %0 = vector.load %arg1[%c0, %c0_0] : memref<8x1xf32, #tpu.memory_space<vmem>>, vector<8x1xf32>
    %c0_1 = arith.constant 0 : index
    %c0_2 = arith.constant 0 : index
    %1 = vector.load %arg2[%c0_1, %c0_2] : memref<1x128xf32, #tpu.memory_space<vmem>>, vector<1x128xf32>
    %2 = vector.broadcast %0 : vector<8x1xf32> to vector<8x128xf32>
    %3 = vector.broadcast %1 : vector<1x128xf32> to vector<8x128xf32>
    %4 = arith.mulf %2, %3 : vector<8x128xf32>
    %5 = math.cos %4 : vector<8x128xf32>
    %6 = math.sin %4 : vector<8x128xf32>
    %7 = tpu.concatenate %5, %6 in 1 : vector<8x128xf32>, vector<8x128xf32> -> vector<8x256xf32>
    %c0_3 = arith.constant 0 : index
    %c0_4 = arith.constant 0 : index
    %8 = vector.load %arg3[%c0_3, %c0_4] : memref<256x32xf32, #tpu.memory_space<vmem>>, vector<256x32xf32>
    %cst = arith.constant dense<0.000000e+00> : vector<8x32xf32>
    %9 = tpu.matmul %7, %8, %cst {dimension_numbers = #tpu.dot_dimension_numbers<[1], [0], [0], [1], [0, 0, 1, 1], [], []>} : vector<8x256xf32>, vector<256x32xf32>, vector<8x32xf32> -> vector<8x32xf32>
    %c0_5 = arith.constant 0 : index
    %c0_6 = arith.constant 0 : index
    %10 = vector.load %arg4[%c0_5, %c0_6] : memref<1x32xf32, #tpu.memory_space<vmem>>, vector<1x32xf32>
    %11 = vector.broadcast %10 : vector<1x32xf32> to vector<8x32xf32>
    %12 = arith.addf %9, %11 : vector<8x32xf32>
    %13 = arith.negf %12 : vector<8x32xf32>
    %14 = math.exp %13 : vector<8x32xf32>
    %cst_7 = arith.constant 1.000000e+00 : f32
    %15 = vector.broadcast %cst_7 : f32 to vector<8x32xf32>
    %16 = arith.addf %15, %14 : vector<8x32xf32>
    %17 = arith.divf %15, %16 : vector<8x32xf32>
    %18 = arith.mulf %12, %17 : vector<8x32xf32>
    %c0_8 = arith.constant 0 : index
    %c0_9 = arith.constant 0 : index
    %19 = vector.load %arg5[%c0_8, %c0_9] : memref<32x32xf32, #tpu.memory_space<vmem>>, vector<32x32xf32>
    %cst_10 = arith.constant dense<0.000000e+00> : vector<8x32xf32>
    %20 = tpu.matmul %18, %19, %cst_10 {dimension_numbers = #tpu.dot_dimension_numbers<[1], [0], [0], [1], [0, 0, 1, 1], [], []>} : vector<8x32xf32>, vector<32x32xf32>, vector<8x32xf32> -> vector<8x32xf32>
    %c0_11 = arith.constant 0 : index
    %c0_12 = arith.constant 0 : index
    %21 = vector.load %arg6[%c0_11, %c0_12] : memref<1x32xf32, #tpu.memory_space<vmem>>, vector<1x32xf32>
    %22 = vector.broadcast %21 : vector<1x32xf32> to vector<8x32xf32>
    %23 = arith.addf %20, %22 : vector<8x32xf32>
    %c0_13 = arith.constant 0 : index
    %c0_14 = arith.constant 0 : index
    %24 = vector.load %arg7[%c0_13, %c0_14] : memref<8x32xf32, #tpu.memory_space<vmem>>, vector<8x32xf32>
    tpu.vector_store %arg7[%c0_13, %c0_14], %23 {strides = array<i32>} : memref<8x32xf32, #tpu.memory_space<vmem>>, vector<8x32xf32>,
    return
  }
  func.func @transform_0(%arg0: i32) -> (i32, i32) {
    %c0_i32 = arith.constant 0 : i32
    %c0_i32_0 = arith.constant 0 : i32
    return %arg0, %c0_i32 : i32, i32
  }
  func.func @transform_1(%arg0: i32) -> (i32, i32) {
    %c0_i32 = arith.constant 0 : i32
    %c0_i32_0 = arith.constant 0 : i32
    %c0_i32_1 = arith.constant 0 : i32
    return %c0_i32, %c0_i32_0 : i32, i32
  }
  func.func @transform_2(%arg0: i32) -> (i32, i32) {
    %c0_i32 = arith.constant 0 : i32
    %c0_i32_0 = arith.constant 0 : i32
    %c0_i32_1 = arith.constant 0 : i32
    return %c0_i32, %c0_i32_0 : i32, i32
  }
  func.func @transform_3(%arg0: i32) -> (i32, i32) {
    %c0_i32 = arith.constant 0 : i32
    %c0_i32_0 = arith.constant 0 : i32
    %c0_i32_1 = arith.constant 0 : i32
    return %c0_i32, %c0_i32_0 : i32, i32
  }
  func.func @transform_4(%arg0: i32) -> (i32, i32) {
    %c0_i32 = arith.constant 0 : i32
    %c0_i32_0 = arith.constant 0 : i32
    %c0_i32_1 = arith.constant 0 : i32
    return %c0_i32, %c0_i32_0 : i32, i32
  }
  func.func @transform_5(%arg0: i32) -> (i32, i32) {
    %c0_i32 = arith.constant 0 : i32
    %c0_i32_0 = arith.constant 0 : i32
    %c0_i32_1 = arith.constant 0 : i32
    return %c0_i32, %c0_i32_0 : i32, i32
  }
  func.func @transform_6(%arg0: i32) -> (i32, i32) {
    %c0_i32 = arith.constant 0 : i32
    %c0_i32_0 = arith.constant 0 : i32
    return %arg0, %c0_i32 : i32, i32
  }
}

</mosaic_0001>

<bundles_post_ra>
// kernel: tpu_custom_call.1
= control target key start
LH: loop header
LB: loop body
LE: loop exit
PB: predicated region body
PF: predicated region fallthrough
CT: control target
= control target key end

     0   :  { %11 = vsyncpa [#allocation3], 0  ;;  %s1212_s0 = inlined_call_operand.vmem [shape: f32[16,1], index: 0, kind: input, shape index: {}]   ;;  %s1213_s1 = inlined_call_operand.vmem [shape: f32[1,128], index: 1, kind: input, shape index: {}]   ;;  %s1214_s2 = inlined_call_operand.vmem [shape: f32[256,32], index: 2, kind: input, shape index: {}]   ;;  %s1215_s3 = inlined_call_operand.vmem [shape: f32[1,32], index: 3, kind: input, shape index: {}]   ;;  %s1216_s4 = inlined_call_operand.vmem [shape: f32[32,32], index: 4, kind: input, shape index: {}]   ;;  %s1217_s5 = inlined_call_operand.vmem [shape: f32[1,32], index: 5, kind: input, shape index: {}]   ;;  %s1218_s6 = inlined_call_operand.hbm [shape: f32[16,32], index: 6, kind: output, shape index: {}]  }
   0x1   :  { %13 = vsyncpa [#allocation3 + $0x1], 0  ;;  %s949_s21 = smov 0   ;;  %s951_s22 = smov 0  }
   0x2   :  { %s953_s23 = smov 0   ;;  %s955_s24 = smov 0  }
   0x3 LB: > { %s970_s25 = sadd.s32 4294967295, %s905_s24   ;;  %s771_s26 = sadd.s32 4294967294, %s905_s24   ;;  %s905_s24 = sphi %s955_s24, %s1224_s24   ;;  %s901_s23 = sphi %s953_s23, %s1223_s23   ;;  %s897_s22 = sphi %s951_s22, %s1222_s22   ;;  %s893_s21 = sphi %s949_s21, %s1221_s21  }
   0x4   : > { %s974_s27 = sadd.s32 1, %s905_s24   ;;  %s157_s28 = sadd.s32 1, %s901_s23 }
   0x5   : > { %s154_s29 = ssub.s32 %s905_s24, %s974_s27  ;;  %p167_p0 = scmp.ne.s32.totalorder %s901_s23, %s897_s22 }
   0x6   : > { %p155_p1 = scmp.eq.s32.totalorder %s154_s29, 0  ;;  %p168_p2 = scmp.eq.s32.totalorder %s970_s25, 1 }
   0x7   : > { %p173_p3 = scmp.ne.s32.totalorder %s897_s22, %s893_s21  ;;  %p174_p4 = scmp.eq.s32.totalorder %s771_s26, 1 }
   0x8   : > { %s985_s30 = scalar_select %p155_p1, %s901_s23, %s157_s28  }
   0x9   : > { %p987_p5 = por %p168_p2, %p167_p0  ;;  %p991_p6 = por %p174_p4, %p173_p3 }
   0xa   : > { %p774_p7 = scmp.ge.s32.totalorder %s905_s24, 1  ;;  %p214_p8 = scmp.lt.s32.totalorder %s905_s24, 3 }
   0xc   : > { %p215_p9 = pnand %p774_p7, %p214_p8 }
   0xd   : > { %p243_p10 = scmp.lt.s32.totalorder (!%p215_p9), %s970_s25, 1  ;;  %s240_s15 = sand.u32 (!%p215_p9), 1, %s897_s22  }
   0xe   : > { %218 = sbr.rel (%p215_p9) target bundleno = 534 (0x216), region = 44  ;;  %s775_s16 = sshll.u32 (!%p215_p9), %s240_s15, 3 }
   0xf   : > { %s786_s17 = sshll.u32 (!%p215_p9), %s970_s25, 3  ;;  %s242_s29 = scalar_lea.vmem (!%p215_p9), [#allocation2], %s775_s16 }
  0x10   : > { %s707_s20 = scalar_lea.hbm (!%p215_p9), %s1218_s6, %s786_s17  ;;  %s697_s11 = scalar_lea.sflag (!%p215_p9), [#allocation3], %s240_s15 }
  0x11   : > { %s863_s17 = scalar_lea.hbm (!%p215_p9), %s1218_s6, 16 }
  0x13   : > { %v907_v0 = vmov 0   ;;  %s244_s9 = scalar_select %p243_p10, %s970_s25, 1  ;;  %v582_v2 = vld [vmem:[%s1214_s2 + $0x78] sm:$0xff]  ;;  %v581_v4 = vld [vmem:[%s1214_s2 + $0x70] sm:$0xff]  ;;  %v580_v6 = vld [vmem:[%s1214_s2 + $0x68] sm:$0xff] }
  0x14   : > { %835 = vset.pattern.permute.xlu0 %v907_v0  ;;  %v598_v3 = vld [vmem:[%s1214_s2 + $0xf8] sm:$0xff]  ;;  %603 = vmatpush.msra.mxu0 %v582_v2  ;;  %v597_v5 = vld [vmem:[%s1214_s2 + $0xf0] sm:$0xff]  ;;  %v596_v7 = vld [vmem:[%s1214_s2 + $0xe8] sm:$0xff]  ;;  %v908_v46 = vmov 2102212464  }
  0x15   : > { %s776_s10 = sshll.u32 %s244_s9, 3  ;;  %623 = vmatpush.msra.mxu1 %v598_v3  ;;  %v579_v8 = vld [vmem:[%s1214_s2 + $0x60] sm:$0xff]  ;;  %v578_v10 = vld [vmem:[%s1214_s2 + $0x58] sm:$0xff]  ;;  %v577_v13 = vld [vmem:[%s1214_s2 + $0x50] sm:$0xff]  ;;  %v909_v48 = vmov 920167782  }
  0x16   : > { %s246_s13 = scalar_lea.vmem %s1212_s0, %s776_s10  ;;  %604 = vmatpush.msra.mxu0 %v581_v4  ;;  %v595_v9 = vld [vmem:[%s1214_s2 + $0xe0] sm:$0xff]  ;;  %v594_v11 = vld [vmem:[%s1214_s2 + $0xd8] sm:$0xff]  ;;  %v593_v14 = vld [vmem:[%s1214_s2 + $0xd0] sm:$0xff]  ;;  %v910_v50 = vmov 683565275   ;;  %s709_s9 = sshll.u32 %s242_s29, 4  ;;  %s710_s9 = int_to_ptr.vmem [resolvable:$true] %s709_s9 }
  0x17   : > { %v247_v1 = vld [vmem:[%s246_s13] sm:$0xff]  ;;  %624 = vmatpush.msra.mxu1 %v597_v5  ;;  %v576_v15 = vld [vmem:[%s1214_s2 + $0x48] sm:$0xff]  ;;  %v574_v22 = vld [vmem:[%s1214_s2 + $0x38] sm:$0xff]  ;;  %v911_v53 = vmov 1326507024   ;;  %s711_s10 = sshll.u32 %s707_s20, 4  ;;  %s712_s10 = int_to_ptr.hbm [resolvable:$true] %s711_s10 }
  0x18   : > { %251 = vperm.xlu0 %835, %v247_v1   ;;  %605 = vmatpush.msra.mxu0 %v580_v6  ;;  %v836_v12 = vld [vmem:[%s1213_s1] ss:$0 sm:$0xff]  ;;  %v592_v16 = vld [vmem:[%s1214_s2 + $0xc8] sm:$0xff]  ;;  %v590_v23 = vld [vmem:[%s1214_s2 + $0xb8] sm:$0xff]  ;;  %v912_v57 = vmov 2475754826  }
  0x19   : > { %625 = vmatpush.msra.mxu1 %v596_v7  ;;  %v575_v19 = vld [vmem:[%s1214_s2 + $0x40] sm:$0xff]  ;;  %v573_v25 = vld [vmem:[%s1214_s2 + $0x30] sm:$0xff]  ;;  %v572_v28 = vld [vmem:[%s1214_s2 + $0x28] sm:$0xff]  ;;  %v913_v60 = vmov 2131351028   ;;  %s857_s12 = sshra.s32 %s712_s10, 4  ;;  %s858_s12 = int_to_ptr.hbm [resolvable:$true] %s857_s12 }
  0x1a   : > { %606 = vmatpush.msra.mxu0 %v579_v8  ;;  %v591_v20 = vld [vmem:[%s1214_s2 + $0xc0] sm:$0xff]  ;;  %v589_v26 = vld [vmem:[%s1214_s2 + $0xb0] sm:$0xff]  ;;  %v588_v29 = vld [vmem:[%s1214_s2 + $0xa8] sm:$0xff]  ;;  %s859_s25 = scalar_lea.hbm %s858_s12, 8  ;;  %p864_p0 = scmp.lt.s32.totalorder %s858_s12, %s1218_s6 }
  0x1b   : > { %626 = vmatpush.msra.mxu1 %v595_v9  ;;  %v571_v32 = vld [vmem:[%s1214_s2 + $0x20] sm:$0xff]  ;;  %v570_v34 = vld [vmem:[%s1214_s2 + $0x18] sm:$0xff]  ;;  %v569_v39 = vld [vmem:[%s1214_s2 + $0x10] sm:$0xff]  ;;  %p860_p11 = scmp.ne.s32.totalorder %s858_s12, %s859_s25  ;;  %p865_p1 = scmp.lt.s32.totalorder %s863_s17, %s859_s25 }
  0x1c   : > { %607 = vmatpush.msra.mxu0 %v578_v10  ;;  %v587_v33 = vld [vmem:[%s1214_s2 + $0xa0] sm:$0xff]  ;;  %v586_v35 = vld [vmem:[%s1214_s2 + $0x98] sm:$0xff]  ;;  %v585_v40 = vld [vmem:[%s1214_s2 + $0x90] sm:$0xff] }
  0x1d   : > { %627 = vmatpush.msra.mxu1 %v594_v11  ;;  %v568_v42 = vld [vmem:[%s1214_s2 + $0x8] sm:$0xff]  ;;  %v567_v55 = vld [vmem:[%s1214_s2] sm:$0xff]  ;;  %p861_p12 = pnand %p860_p11, %p987_p5  ;;  %p866_p2 = por %p865_p1, %p864_p0 }
  0x1e   : > { %608 = vmatpush.msra.mxu0 %v577_v13  ;;  %v584_v43 = vld [vmem:[%s1214_s2 + $0x88] sm:$0xff]  ;;  %v583_v56 = vld [vmem:[%s1214_s2 + $0x80] sm:$0xff] }
  0x1f   : > { %628 = vmatpush.msra.mxu1 %v593_v14  ;;  %p862_p13 = pneg %p861_p12 }
  0x20   : > { %609 = vmatpush.msra.mxu0 %v576_v15 }
  0x21   : > { %629 = vmatpush.msra.mxu1 %v592_v16  ;;  %p867_p3 = pnand %p866_p2, %p862_p13 }
  0x22   : > { %610 = vmatpush.msra.mxu0 %v575_v19 }
  0x23   : > { %630 = vmatpush.msra.mxu1 %v591_v20 }
  0x24   : > { %611 = vmatpush.msra.mxu0 %v574_v22 }
  0x25   : > { %631 = vmatpush.msra.mxu1 %v590_v23 }
  0x26   : > { %612 = vmatpush.msra.mxu0 %v573_v25 }
  0x27   : > { %632 = vmatpush.msra.mxu1 %v589_v26 }
  0x28   : > { %613 = vmatpush.msra.mxu0 %v572_v28 }
  0x29   : > { %633 = vmatpush.msra.mxu1 %v588_v29 }
  0x2a   : > { %614 = vmatpush.msra.mxu0 %v571_v32 }
  0x2b   : > { %634 = vmatpush.msra.mxu1 %v587_v33 }
  0x2c   : > { %615 = vmatpush.msra.mxu0 %v570_v34 }
  0x2d   : > { %635 = vmatpush.msra.mxu1 %v586_v35 }
  0x2e   : > { %616 = vmatpush.msra.mxu0 %v569_v39 }
  0x2f   : > { %636 = vmatpush.msra.mxu1 %v585_v40 }
  0x30   : > { %617 = vmatpush.msra.mxu0 %v568_v42 }
  0x31   : > { %637 = vmatpush.msra.mxu1 %v584_v43 }
  0x32   : > { %618 = vmatpush.msra.mxu0 %v567_v55 }
  0x33   : > { %638 = vmatpush.msra.mxu1 %v583_v56 }
  0x8a   : > { %v252_v17 = vpop.permute.xlu0 %251 }
  0x8b   : > { %v1048_v18 = vmul.f32 %v836_v12, %v252_v17 }
  0x8d   : > { %v261_v21 = vand.u32 2139095040, %v1048_v18  ;;  %v258_v30 = vand.u32 2147483647, %v1048_v18  ;;  %vm260_vm12 = vcmp.lt.s32.totalorder %v1048_v18, 0 }
  0x8f   : > { %v262_v24 = vshrl.u32 %v261_v21, 23  ;;  %v265_v36 = vand.u32 8388607, %v258_v30  ;;  %vm259_vm13 = vcmp.le.f32.partialorder %v258_v30, 0.7853982 }
  0x91   : > { %v777_v27 = vadd.s32 4294967169, %v262_v24  ;;  %v266_v44 = vor.u32 8388608, %v265_v36 }
  0x93   : > { %v268_v31 = vadd.s32 1, %v777_v27  ;;  %v1118_v4 = vshll.u32 %v266_v44, 8 }
  0x95   : > { %vm269_vm0 = vcmp.gt.s32.totalorder %v268_v31, 0  ;;  %v307_v14 = vand.u32 65535, %v1118_v4  ;;  %v308_v16 = vshrl.u32 %v1118_v4, 16 }
  0x96   : > { %v270_v37 = vsel %vm269_vm0, %v268_v31, 0 }
  0x97   : > { %v272_v38 = vand.u32 31, %v270_v37  ;;  %v1104_v45 = vshrl.u32 %v270_v37, 5 }
  0x99   : > { %v1096_v41 = vsub.s32 32, %v272_v38  ;;  %v284_v47 = vshll.u32 %v908_v46, %v272_v38  ;;  %v287_v49 = vshll.u32 %v909_v48, %v272_v38  ;;  %v275_v51 = vshll.u32 %v910_v50, %v272_v38 }
  0x9a   : > { %v278_v59 = vshll.u32 %v912_v57, %v272_v38  ;;  %v281_v62 = vshll.u32 %v913_v60, %v272_v38  ;;  %vm293_vm1 = vcmp.lt.s32.totalorder %v1104_v45, 4  ;;  %vm290_vm2 = vcmp.lt.s32.totalorder %v1104_v45, 1 }
  0x9b   : > { %v285_v52 = vshrl.u32 %v909_v48, %v1096_v41  ;;  %v288_v54 = vshrl.u32 %v911_v53, %v1096_v41  ;;  %v276_v58 = vshrl.u32 %v912_v57, %v1096_v41  ;;  %v279_v61 = vshrl.u32 %v913_v60, %v1096_v41 }
  0x9c   : > { %v282_v63 = vshrl.u32 %v908_v46, %v1096_v41  ;;  %vm292_vm3 = vcmp.lt.s32.totalorder %v1104_v45, 3  ;;  %vm291_vm4 = vcmp.lt.s32.totalorder %v1104_v45, 2  ;;  %v274_v42 = vshrl.u32 %v910_v50, %v1096_v41 }
  0x9d   : > { %v286_v1 = vor.u32 %v285_v52, %v284_v47  ;;  %v289_v2 = vor.u32 %v288_v54, %v287_v49  ;;  %v277_v3 = vor.u32 %v276_v58, %v275_v51  ;;  %v280_v5 = vor.u32 %v279_v61, %v278_v59 }
  0x9e   : > { %v283_v6 = vor.u32 %v282_v63, %v281_v62 }
  0x9f   : > { %v299_v7 = vsel %vm293_vm1, %v286_v1, 920167782  ;;  %v303_v8 = vsel %vm293_vm1, %v289_v2, 1326507024  ;;  %v298_v9 = vsel %vm290_vm2, %v277_v3, %v280_v5  ;;  %v294_v49 = vsel %vm290_vm2, %v274_v42, %v277_v3 }
  0xa0   : > { %v300_v10 = vsel %vm292_vm3, %v283_v6, %v299_v7  ;;  %v302_v11 = vsel %vm290_vm2, %v280_v5, %v283_v6  ;;  %v304_v13 = vsel %vm292_vm3, %v286_v1, %v303_v8  ;;  %v295_v38 = vsel %vm293_vm1, %v283_v6, 2102212464 }
  0xa1   : > { %v301_v12 = vsel %vm291_vm4, %v298_v9, %v300_v10  ;;  %v305_v15 = vsel %vm291_vm4, %v302_v11, %v304_v13  ;;  %v296_v51 = vsel %vm292_vm3, %v280_v5, %v295_v38 }
  0xa2   : > { %v331_v17 = vand.u32 65535, %v301_v12  ;;  %v332_v19 = vshrl.u32 %v301_v12, 16  ;;  %v309_v20 = vand.u32 65535, %v305_v15  ;;  %v310_v21 = vshrl.u32 %v305_v15, 16 }
  0xa3   : > { %v297_v50 = vsel %vm291_vm4, %v294_v49, %v296_v51  ;;  %vm401_vm4 = vweird.f32 %v1048_v18 }
  0xa4   : > { %v334_v22 = vmul.u32 %v332_v19, %v307_v14  ;;  %v335_v23 = vmul.u32 %v331_v17, %v308_v16  ;;  %v312_v24 = vmul.u32 %v310_v21, %v307_v14  ;;  %v313_v25 = vmul.u32 %v309_v20, %v308_v16 }
  0xa5   : > { %v333_v26 = vmul.u32 %v331_v17, %v307_v14  ;;  %v311_v28 = vmul.u32 %v309_v20, %v307_v14  ;;  %v336_v31 = vmul.u32 %v332_v19, %v308_v16  ;;  %v314_v32 = vmul.u32 %v310_v21, %v308_v16 }
  0xa6   : > { %v337_v27 = vshll.u32 %v334_v22, 16  ;;  %v315_v29 = vshll.u32 %v312_v24, 16  ;;  %v339_v33 = vshll.u32 %v335_v23, 16  ;;  %v317_v35 = vshll.u32 %v313_v25, 16 }
  0xa7   : > { %v338_v47 = vshrl.u32 %v334_v22, 16  ;;  %v316_v52 = vshrl.u32 %v312_v24, 16  ;;  %v340_v54 = vshrl.u32 %v335_v23, 16  ;;  %v318_v56 = vshrl.u32 %v313_v25, 16 }
  0xa8   : > { %vm341_vm5 = vc.u32 %v333_v26, %v337_v27  ;;  %v343_v34 = vadd.s32 %v337_v27, %v333_v26  ;;  %vm319_vm6 = vc.u32 %v311_v28, %v315_v29  ;;  %v321_v36 = vadd.s32 %v315_v29, %v311_v28 }
  0xa9   : > { %v342_v37 = vsel %vm341_vm5, 1, %v907_v0  ;;  %v320_v39 = vsel %vm319_vm6, 1, %v907_v0  ;;  %v351_v60 = vmul.u32 %v1118_v4, %v297_v50  ;;  %v666_v50 = vld [vmem:[%s1216_s4 + $0x18] sm:$0xff] }
  0xaa   : > { %v344_v40 = vadd.s32 %v342_v37, %v336_v31  ;;  %vm345_vm7 = vc.u32 %v343_v34, %v339_v33  ;;  %v322_v43 = vadd.s32 %v320_v39, %v314_v32  ;;  %vm323_vm8 = vc.u32 %v321_v36, %v317_v35  ;;  %687 = vmatpush.msra.mxu2 %v666_v50 }
  0xab   : > { %v346_v44 = vsel %vm345_vm7, 1, %v907_v0  ;;  %v324_v46 = vsel %vm323_vm8, 1, %v907_v0  ;;  %v347_v0 = vadd.s32 %v343_v34, %v339_v33 }
  0xac   : > { %v348_v48 = vadd.s32 %v346_v44, %v344_v40  ;;  %v326_v53 = vadd.s32 %v324_v46, %v322_v43 }
  0xae   : > { %v349_v55 = vadd.s32 %v348_v48, %v338_v47  ;;  %v327_v41 = vadd.s32 %v326_v53, %v316_v52 }
  0xb0   : > { %v350_v57 = vadd.s32 %v349_v55, %v340_v54  ;;  %v328_v58 = vadd.s32 %v327_v41, %v318_v56  ;;  %v837_v41 = vld [vmem:[%s1215_s3] ss:$0 sm:$0xff] }
  0xb2   : > { %v354_v59 = vadd.s32 1, %v350_v57  ;;  %vm353_vm9 = vc.u32 %v328_v58, %v347_v0  ;;  %v352_v9 = vadd.s32 %v347_v0, %v328_v58  ;;  %v664_v0 = vld [vmem:[%s1216_s4 + $0x8] sm:$0xff] }
  0xb4   : > { %v355_v61 = vsel %vm353_vm9, %v354_v59, %v350_v57  ;;  %vm671_vm9 = vcmask 261120  }
  0xb5   : > { %v356_v62 = vadd.s32 %v355_v61, %v351_v60  ;;  %v663_v60 = vld [vmem:[%s1216_s4] sm:$0xff] }
  0xb7   : > { %v357_v63 = vadd.s32 536870912, %v356_v62 }
  0xb9   : > { %v358_v1 = vshrl.u32 %v357_v63, 30 }
  0xbb   : > { %v359_v2 = vshll.u32 %v358_v1, 30  ;;  %v382_v23 = vsub.s32 4, %v358_v1 }
  0xbd   : > { %v360_v3 = vsub.s32 %v356_v62, %v359_v2  ;;  %v383_v28 = vsel %vm260_vm12, %v382_v23, %v358_v1 }
  0xbe   : > { %v385_v32 = vsel %vm259_vm13, 0, %v383_v28 }
  0xbf   : > { %vm361_vm10 = vcmp.lt.s32.totalorder %v360_v3, 0  ;;  %v362_v5 = vsub.s32 0, %v360_v3  ;;  %v556_v37 = vadd.s32 3, %v385_v32  ;;  %v402_v42 = vand.u32 3, %v385_v32 }
  0xc1   : > { %v363_v6 = vsel %vm361_vm10, %v362_v5, %v360_v3  ;;  %v557_v43 = vand.u32 3, %v556_v37  ;;  %vm403_vm14 = vcmp.lt.s32.totalorder %v402_v42, 2  ;;  %vm404_vm15 = vcmp.eq.s32.totalorder %v402_v42, 0 }
  0xc2   : > { %v364_v7 = vclz %v363_v6  ;;  %vm407_vm0 = vcmp.eq.s32.totalorder %v402_v42, 2 }
  0xc3   : > { %vm558_vm1 = vcmp.lt.s32.totalorder %v557_v43, 2  ;;  %vm559_vm2 = vcmp.eq.s32.totalorder %v557_v43, 0  ;;  %vm562_vm3 = vcmp.eq.s32.totalorder %v557_v43, 2 }
  0xc4   : > { %v778_v8 = vadd.s32 4294967294, %v364_v7 }
  0xc6   : > { %vm779_vm11 = vcmp.lt.s32.totalorder %v778_v8, 0 }
  0xc7   : > { %v367_v45 = vsel %vm779_vm11, 0, %v778_v8 }
  0xc8   : > { %v368_v10 = vsub.s32 32, %v367_v45  ;;  %v372_v11 = vsub.s32 4294967266, %v367_v45  ;;  %v369_v12 = vshll.u32 %v360_v3, %v367_v45 }
  0xca   : > { %v370_v13 = vshrl.u32 %v352_v9, %v368_v10  ;;  %v373_v4 = vadd.s32 127, %v372_v11 }
  0xcc   : > { %v371_v14 = vor.u32 %v370_v13, %v369_v12  ;;  %v374_v15 = vshll.u32 %v373_v4, 23  ;;  %v838_v13 = vld [vmem:[%s1217_s5] ss:$0 sm:$0xff] }
  0xce   : > { %v375_v16 = vor.u32 4788187, %v374_v15  ;;  %v378_v19 = vcvt.s32.f32 %v371_v14 }
  0xd0   : > { %v376_v17 = vand.u32 2147483647, %v375_v16 }
  0xd2   : > { %v379_v20 = vmul.f32 %v378_v19, %v376_v17 }
  0xd4   : > { %v380_v21 = vxor.u32 2147483648, %v379_v20 }
  0xd6   : > { %v381_v22 = vsel %vm260_vm12, %v380_v21, %v379_v20 }
  0xd7   : > { %v384_v24 = vsel %vm259_vm13, %v1048_v18, %v381_v22  ;;  %v665_v18 = vld [vmem:[%s1216_s4 + $0x10] sm:$0xff] }
  0xd8   : > { %v386_v25 = vmul.f32 %v384_v24, %v384_v24  ;;  %688 = vmatpush.msra.mxu2 %v665_v18 }
  0xda   : > { %v387_v26 = vmul.f32 -0.001358992, %v386_v25  ;;  %v394_v27 = vmul.f32 -0.00019511016, %v386_v25  ;;  %689 = vmatpush.msra.mxu2 %v664_v0 }
  0xdc   : > { %v388_v29 = vadd.f32 0.041655596, %v387_v26  ;;  %v395_v31 = vadd.f32 0.008332121, %v394_v27  ;;  %690 = vmatpush.msra.mxu2 %v663_v60 }
  0xde   : > { %v389_v33 = vmul.f32 %v388_v29, %v386_v25  ;;  %v396_v34 = vmul.f32 %v395_v31, %v386_v25 }
  0xe0   : > { %v390_v35 = vadd.f32 -0.4999988, %v389_v33  ;;  %v397_v36 = vadd.f32 -0.16666654, %v396_v34 }
  0xe2   : > { %v391_v38 = vmul.f32 %v390_v35, %v386_v25  ;;  %v398_v39 = vmul.f32 %v397_v36, %v386_v25 }
  0xe4   : > { %v392_v40 = vadd.f32 1.0, %v391_v38  ;;  %v399_v30 = vadd.f32 1.0, %v398_v39 }
  0xe6   : > { %v400_v44 = vmul.f32 %v399_v30, %v384_v24  ;;  %v408_v46 = vxor.u32 2147483648, %v392_v40 }
  0xe8   : > { %v405_v47 = vxor.u32 2147483648, %v400_v44  ;;  %v409_v49 = vsel %vm407_vm0, %v408_v46, %v400_v44  ;;  %v564_v52 = vsel %vm562_vm3, %v408_v46, %v400_v44 }
  0xea   : > { %v406_v48 = vsel %vm404_vm15, %v392_v40, %v405_v47  ;;  %v561_v51 = vsel %vm559_vm2, %v392_v40, %v405_v47 }
  0xeb   : > { %v410_v53 = vsel %vm403_vm14, %v406_v48, %v409_v49  ;;  %v565_v54 = vsel %vm558_vm1, %v561_v51, %v564_v52 }
  0xec   : > { %v411_v55 = vsel %vm401_vm4, nan, %v410_v53  ;;  %v566_v56 = vsel %vm401_vm4, nan, %v565_v54 }
  0xed   : > { %619 = vmatmul.f32.vlgmr.msra.gmra.mxu0 %v411_v55  ;;  %639 = vmatmul.f32.vlgmr.msra.gmra.mxu1 %v566_v56 }
 0x16a   : > { %v620_v57 = vpop.f32.mrf.mxu0  ;;  %v640_v59 = vpop.f32.mrf.mxu1 }
 0x16b   : > { %v621_v58 = vadd.f32 %v837_v41, %v620_v57 }
 0x16d   : > { %v641_v61 = vadd.f32 %v640_v59, %v621_v58 }
 0x16f   : > { %v783_v62 = vmul.f32 -1.442695, %v641_v61 }
 0x171   : > { %839 = vpow2.f32 %v783_v62 }
 0x177   : > { %v840_v63 = vpop.eup %839 }
 0x178   : > { %v646_v1 = vadd.f32 1.0, %v840_v63 }
 0x17a   : > { %841 = vrcp.f32 %v646_v1  ;;  %v658_v6 = vand.u32 2147483648, %v646_v1  ;;  %v656_v8 = vand.u32 2147483647, %v646_v1  ;;  %vm652_vm6 = vweird.f32 %v646_v1 }
 0x17c   : > { %v659_v9 = vor.u32 1.1754944e-38, %v658_v6  ;;  %vm657_vm8 = vcmp.eq.f32.partialorder %v656_v8, 8.507059e+37 }
 0x180   : > { %v842_v2 = vpop.eup %841 }
 0x181   : > { %v648_v3 = vmul.f32 %v842_v2, %v646_v1  ;;  %vm653_vm5 = vweird.f32 %v842_v2 }
 0x182   : > { %vm654_vm7 = vmor %vm652_vm6, %vm653_vm5 }
 0x183   : > { %v649_v5 = vsub.f32 1.0, %v648_v3 }
 0x185   : > { %v650_v7 = vmul.f32 %v842_v2, %v649_v5 }
 0x187   : > { %v651_v45 = vadd.f32 %v842_v2, %v650_v7 }
 0x189   : > { %v655_v10 = vsel %vm654_vm7, %v842_v2, %v651_v45 }
 0x18a   : > { %v660_v11 = vsel %vm657_vm8, %v659_v9, %v655_v10 }
 0x18b   : > { %v662_v12 = vmul.f32 %v660_v11, %v641_v61 }
 0x18d   : > { %784 = vmatmul.msk.f32.vlgmr.msra.gmra.mxu2 %vm671_vm9, %v662_v12 }
 0x210   : > { %v692_v4 = vpop.f32.mrf.mxu2 }
 0x211   : > { %v693_v14 = vadd.f32 %v838_v13, %v692_v4 }
 0x213   : > { %695 = vst.msk [vmem:[%s242_s29] sm:$0xff] %vm671_vm9, %v693_v14 }
 0x214   : > { %870 = shalt.err (!%p867_p3)
}
 0x215   : > { %789 = dma.vmem_to_hbm [thread:$0]  (%p987_p5), %s710_s9, 128, %s712_s10, %s697_s11  }
 0x216 PF: > { %p795_p4 = scmp.ge.s32.totalorder %s905_s24, 2  ;;  %s723_s15 = sand.u32 1, %s893_s21  }
 0x217   : > { %s724_s19 = scalar_lea.sflag [#allocation3], %s723_s15 }
 0x218   : > { %p792_p7 = pnand %p795_p4, %p991_p6 }
 0x21a   : > { %p793_p8 = pneg %p792_p7 }
 0x21c   : > { %888 = dma.done.wait (%p793_p8), %s724_s19, 128  }
 0x21d   : > { %890 = vsyncadd (%p793_p8), %s724_s19, 4294967168  ;;  %p16_p9 = scmp.ge.s32.totalorder %s974_s27, 4   ;;  %s1221_s21 = smov %s897_s22 }
 0x21e   : > { %s1222_s22 = smov %s901_s23  ;;  %s1223_s23 = smov %s985_s30 }
 0x21f   : > { %s1224_s24 = smov %s974_s27  ;;  %18 = sbr.rel (!%p16_p9) target bundleno = 3 (0x3), region = 79 }
 0x224   :  { %730 = vsyncpa [#allocation3], 1 }
 0x225   :  { %732 = vsyncpa [#allocation3 + $0x1], 1 }

// kernel: tpu_custom_call.1
= control target key start
LH: loop header
LB: loop body
LE: loop exit
PB: predicated region body
PF: predicated region fallthrough
CT: control target
= control target key end

     0   :  { %11 = vsyncpa [#allocation3], 0  ;;  %s1212_s0 = inlined_call_operand.vmem [shape: f32[16,1], index: 0, kind: input, shape index: {}]   ;;  %s1213_s1 = inlined_call_operand.vmem [shape: f32[1,128], index: 1, kind: input, shape index: {}]   ;;  %s1214_s2 = inlined_call_operand.vmem [shape: f32[256,32], index: 2, kind: input, shape index: {}]   ;;  %s1215_s3 = inlined_call_operand.vmem [shape: f32[1,32], index: 3, kind: input, shape index: {}]   ;;  %s1216_s4 = inlined_call_operand.vmem [shape: f32[32,32], index: 4, kind: input, shape index: {}]   ;;  %s1217_s5 = inlined_call_operand.vmem [shape: f32[1,32], index: 5, kind: input, shape index: {}]   ;;  %s1218_s6 = inlined_call_operand.hbm [shape: f32[16,32], index: 6, kind: output, shape index: {}]  }
   0x1   :  { %13 = vsyncpa [#allocation3 + $0x1], 0  ;;  %s949_s21 = smov 0   ;;  %s951_s22 = smov 0  }
   0x2   :  { %s953_s23 = smov 0   ;;  %s955_s24 = smov 0  }
   0x3 LB: > { %s970_s25 = sadd.s32 4294967295, %s905_s24   ;;  %s771_s26 = sadd.s32 4294967294, %s905_s24   ;;  %s905_s24 = sphi %s955_s24, %s1224_s24   ;;  %s901_s23 = sphi %s953_s23, %s1223_s23   ;;  %s897_s22 = sphi %s951_s22, %s1222_s22   ;;  %s893_s21 = sphi %s949_s21, %s1221_s21  }
   0x4   : > { %s974_s27 = sadd.s32 1, %s905_s24   ;;  %s157_s28 = sadd.s32 1, %s901_s23 }
   0x5   : > { %s154_s29 = ssub.s32 %s905_s24, %s974_s27  ;;  %p167_p0 = scmp.ne.s32.totalorder %s901_s23, %s897_s22 }
   0x6   : > { %p155_p1 = scmp.eq.s32.totalorder %s154_s29, 0  ;;  %p168_p2 = scmp.eq.s32.totalorder %s970_s25, 1 }
   0x7   : > { %p173_p3 = scmp.ne.s32.totalorder %s897_s22, %s893_s21  ;;  %p174_p4 = scmp.eq.s32.totalorder %s771_s26, 1 }
   0x8   : > { %s985_s30 = scalar_select %p155_p1, %s901_s23, %s157_s28  }
   0x9   : > { %p987_p5 = por %p168_p2, %p167_p0  ;;  %p991_p6 = por %p174_p4, %p173_p3 }
   0xa   : > { %p774_p7 = scmp.ge.s32.totalorder %s905_s24, 1  ;;  %p214_p8 = scmp.lt.s32.totalorder %s905_s24, 3 }
   0xc   : > { %p215_p9 = pnand %p774_p7, %p214_p8 }
   0xd   : > { %p243_p10 = scmp.lt.s32.totalorder (!%p215_p9), %s970_s25, 1  ;;  %s240_s15 = sand.u32 (!%p215_p9), 1, %s897_s22  }
   0xe   : > { %218 = sbr.rel (%p215_p9) target bundleno = 534 (0x216), region = 44  ;;  %s775_s16 = sshll.u32 (!%p215_p9), %s240_s15, 3 }
   0xf   : > { %s786_s17 = sshll.u32 (!%p215_p9), %s970_s25, 3  ;;  %s242_s29 = scalar_lea.vmem (!%p215_p9), [#allocation2], %s775_s16 }
  0x10   : > { %s707_s20 = scalar_lea.hbm (!%p215_p9), %s1218_s6, %s786_s17  ;;  %s697_s11 = scalar_lea.sflag (!%p215_p9), [#allocation3], %s240_s15 }
  0x11   : > { %s863_s17 = scalar_lea.hbm (!%p215_p9), %s1218_s6, 16 }
  0x13   : > { %v907_v0 = vmov 0   ;;  %s244_s9 = scalar_select %p243_p10, %s970_s25, 1  ;;  %v582_v2 = vld [vmem:[%s1214_s2 + $0x78] sm:$0xff]  ;;  %v581_v4 = vld [vmem:[%s1214_s2 + $0x70] sm:$0xff]  ;;  %v580_v6 = vld [vmem:[%s1214_s2 + $0x68] sm:$0xff] }
  0x14   : > { %835 = vset.pattern.permute.xlu0 %v907_v0  ;;  %v598_v3 = vld [vmem:[%s1214_s2 + $0xf8] sm:$0xff]  ;;  %603 = vmatpush.msra.mxu0 %v582_v2  ;;  %v597_v5 = vld [vmem:[%s1214_s2 + $0xf0] sm:$0xff]  ;;  %v596_v7 = vld [vmem:[%s1214_s2 + $0xe8] sm:$0xff]  ;;  %v908_v46 = vmov 2102212464  }
  0x15   : > { %s776_s10 = sshll.u32 %s244_s9, 3  ;;  %623 = vmatpush.msra.mxu1 %v598_v3  ;;  %v579_v8 = vld [vmem:[%s1214_s2 + $0x60] sm:$0xff]  ;;  %v578_v10 = vld [vmem:[%s1214_s2 + $0x58] sm:$0xff]  ;;  %v577_v13 = vld [vmem:[%s1214_s2 + $0x50] sm:$0xff]  ;;  %v909_v48 = vmov 920167782  }
  0x16   : > { %s246_s13 = scalar_lea.vmem %s1212_s0, %s776_s10  ;;  %604 = vmatpush.msra.mxu0 %v581_v4  ;;  %v595_v9 = vld [vmem:[%s1214_s2 + $0xe0] sm:$0xff]  ;;  %v594_v11 = vld [vmem:[%s1214_s2 + $0xd8] sm:$0xff]  ;;  %v593_v14 = vld [vmem:[%s1214_s2 + $0xd0] sm:$0xff]  ;;  %v910_v50 = vmov 683565275   ;;  %s709_s9 = sshll.u32 %s242_s29, 4  ;;  %s710_s9 = int_to_ptr.vmem [resolvable:$true] %s709_s9 }
  0x17   : > { %v247_v1 = vld [vmem:[%s246_s13] sm:$0xff]  ;;  %624 = vmatpush.msra.mxu1 %v597_v5  ;;  %v576_v15 = vld [vmem:[%s1214_s2 + $0x48] sm:$0xff]  ;;  %v574_v22 = vld [vmem:[%s1214_s2 + $0x38] sm:$0xff]  ;;  %v911_v53 = vmov 1326507024   ;;  %s711_s10 = sshll.u32 %s707_s20, 4  ;;  %s712_s10 = int_to_ptr.hbm [resolvable:$true] %s711_s10 }
  0x18   : > { %251 = vperm.xlu0 %835, %v247_v1   ;;  %605 = vmatpush.msra.mxu0 %v580_v6  ;;  %v836_v12 = vld [vmem:[%s1213_s1] ss:$0 sm:$0xff]  ;;  %v592_v16 = vld [vmem:[%s1214_s2 + $0xc8] sm:$0xff]  ;;  %v590_v23 = vld [vmem:[%s1214_s2 + $0xb8] sm:$0xff]  ;;  %v912_v57 = vmov 2475754826  }
  0x19   : > { %625 = vmatpush.msra.mxu1 %v596_v7  ;;  %v575_v19 = vld [vmem:[%s1214_s2 + $0x40] sm:$0xff]  ;;  %v573_v25 = vld [vmem:[%s1214_s2 + $0x30] sm:$0xff]  ;;  %v572_v28 = vld [vmem:[%s1214_s2 + $0x28] sm:$0xff]  ;;  %v913_v60 = vmov 2131351028   ;;  %s857_s12 = sshra.s32 %s712_s10, 4  ;;  %s858_s12 = int_to_ptr.hbm [resolvable:$true] %s857_s12 }
  0x1a   : > { %606 = vmatpush.msra.mxu0 %v579_v8  ;;  %v591_v20 = vld [vmem:[%s1214_s2 + $0xc0] sm:$0xff]  ;;  %v589_v26 = vld [vmem:[%s1214_s2 + $0xb0] sm:$0xff]  ;;  %v588_v29 = vld [vmem:[%s1214_s2 + $0xa8] sm:$0xff]  ;;  %s859_s25 = scalar_lea.hbm %s858_s12, 8  ;;  %p864_p0 = scmp.lt.s32.totalorder %s858_s12, %s1218_s6 }
  0x1b   : > { %626 = vmatpush.msra.mxu1 %v595_v9  ;;  %v571_v32 = vld [vmem:[%s1214_s2 + $0x20] sm:$0xff]  ;;  %v570_v34 = vld [vmem:[%s1214_s2 + $0x18] sm:$0xff]  ;;  %v569_v39 = vld [vmem:[%s1214_s2 + $0x10] sm:$0xff]  ;;  %p860_p11 = scmp.ne.s32.totalorder %s858_s12, %s859_s25  ;;  %p865_p1 = scmp.lt.s32.totalorder %s863_s17, %s859_s25 }
  0x1c   : > { %607 = vmatpush.msra.mxu0 %v578_v10  ;;  %v587_v33 = vld [vmem:[%s1214_s2 + $0xa0] sm:$0xff]  ;;  %v586_v35 = vld [vmem:[%s1214_s2 + $0x98] sm:$0xff]  ;;  %v585_v40 = vld [vmem:[%s1214_s2 + $0x90] sm:$0xff] }
  0x1d   : > { %627 = vmatpush.msra.mxu1 %v594_v11  ;;  %v568_v42 = vld [vmem:[%s1214_s2 + $0x8] sm:$0xff]  ;;  %v567_v55 = vld [vmem:[%s1214_s2] sm:$0xff]  ;;  %p861_p12 = pnand %p860_p11, %p987_p5  ;;  %p866_p2 = por %p865_p1, %p864_p0 }
  0x1e   : > { %608 = vmatpush.msra.mxu0 %v577_v13  ;;  %v584_v43 = vld [vmem:[%s1214_s2 + $0x88] sm:$0xff]  ;;  %v583_v56 = vld [vmem:[%s1214_s2 + $0x80] sm:$0xff] }
  0x1f   : > { %628 = vmatpush.msra.mxu1 %v593_v14  ;;  %p862_p13 = pneg %p861_p12 }
  0x20   : > { %609 = vmatpush.msra.mxu0 %v576_v15 }
  0x21   : > { %629 = vmatpush.msra.mxu1 %v592_v16  ;;  %p867_p3 = pnand %p866_p2, %p862_p13 }
  0x22   : > { %610 = vmatpush.msra.mxu0 %v575_v19 }
  0x23   : > { %630 = vmatpush.msra.mxu1 %v591_v20 }
  0x24   : > { %611 = vmatpush.msra.mxu0 %v574_v22 }
  0x25   : > { %631 = vmatpush.msra.mxu1 %v590_v23 }
  0x26   : > { %612 = vmatpush.msra.mxu0 %v573_v25 }
  0x27   : > { %632 = vmatpush.msra.mxu1 %v589_v26 }
  0x28   : > { %613 = vmatpush.msra.mxu0 %v572_v28 }
  0x29   : > { %633 = vmatpush.msra.mxu1 %v588_v29 }
  0x2a   : > { %614 = vmatpush.msra.mxu0 %v571_v32 }
  0x2b   : > { %634 = vmatpush.msra.mxu1 %v587_v33 }
  0x2c   : > { %615 = vmatpush.msra.mxu0 %v570_v34 }
  0x2d   : > { %635 = vmatpush.msra.mxu1 %v586_v35 }
  0x2e   : > { %616 = vmatpush.msra.mxu0 %v569_v39 }
  0x2f   : > { %636 = vmatpush.msra.mxu1 %v585_v40 }
  0x30   : > { %617 = vmatpush.msra.mxu0 %v568_v42 }
  0x31   : > { %637 = vmatpush.msra.mxu1 %v584_v43 }
  0x32   : > { %618 = vmatpush.msra.mxu0 %v567_v55 }
  0x33   : > { %638 = vmatpush.msra.mxu1 %v583_v56 }
  0x8a   : > { %v252_v17 = vpop.permute.xlu0 %251 }
  0x8b   : > { %v1048_v18 = vmul.f32 %v836_v12, %v252_v17 }
  0x8d   : > { %v261_v21 = vand.u32 2139095040, %v1048_v18  ;;  %v258_v30 = vand.u32 2147483647, %v1048_v18  ;;  %vm260_vm12 = vcmp.lt.s32.totalorder %v1048_v18, 0 }
  0x8f   : > { %v262_v24 = vshrl.u32 %v261_v21, 23  ;;  %v265_v36 = vand.u32 8388607, %v258_v30  ;;  %vm259_vm13 = vcmp.le.f32.partialorder %v258_v30, 0.7853982 }
  0x91   : > { %v777_v27 = vadd.s32 4294967169, %v262_v24  ;;  %v266_v44 = vor.u32 8388608, %v265_v36 }
  0x93   : > { %v268_v31 = vadd.s32 1, %v777_v27  ;;  %v1118_v4 = vshll.u32 %v266_v44, 8 }
  0x95   : > { %vm269_vm0 = vcmp.gt.s32.totalorder %v268_v31, 0  ;;  %v307_v14 = vand.u32 65535, %v1118_v4  ;;  %v308_v16 = vshrl.u32 %v1118_v4, 16 }
  0x96   : > { %v270_v37 = vsel %vm269_vm0, %v268_v31, 0 }
  0x97   : > { %v272_v38 = vand.u32 31, %v270_v37  ;;  %v1104_v45 = vshrl.u32 %v270_v37, 5 }
  0x99   : > { %v1096_v41 = vsub.s32 32, %v272_v38  ;;  %v284_v47 = vshll.u32 %v908_v46, %v272_v38  ;;  %v287_v49 = vshll.u32 %v909_v48, %v272_v38  ;;  %v275_v51 = vshll.u32 %v910_v50, %v272_v38 }
  0x9a   : > { %v278_v59 = vshll.u32 %v912_v57, %v272_v38  ;;  %v281_v62 = vshll.u32 %v913_v60, %v272_v38  ;;  %vm293_vm1 = vcmp.lt.s32.totalorder %v1104_v45, 4  ;;  %vm290_vm2 = vcmp.lt.s32.totalorder %v1104_v45, 1 }
  0x9b   : > { %v285_v52 = vshrl.u32 %v909_v48, %v1096_v41  ;;  %v288_v54 = vshrl.u32 %v911_v53, %v1096_v41  ;;  %v276_v58 = vshrl.u32 %v912_v57, %v1096_v41  ;;  %v279_v61 = vshrl.u32 %v913_v60, %v1096_v41 }
  0x9c   : > { %v282_v63 = vshrl.u32 %v908_v46, %v1096_v41  ;;  %vm292_vm3 = vcmp.lt.s32.totalorder %v1104_v45, 3  ;;  %vm291_vm4 = vcmp.lt.s32.totalorder %v1104_v45, 2  ;;  %v274_v42 = vshrl.u32 %v910_v50, %v1096_v41 }
  0x9d   : > { %v286_v1 = vor.u32 %v285_v52, %v284_v47  ;;  %v289_v2 = vor.u32 %v288_v54, %v287_v49  ;;  %v277_v3 = vor.u32 %v276_v58, %v275_v51  ;;  %v280_v5 = vor.u32 %v279_v61, %v278_v59 }
  0x9e   : > { %v283_v6 = vor.u32 %v282_v63, %v281_v62 }
  0x9f   : > { %v299_v7 = vsel %vm293_vm1, %v286_v1, 920167782  ;;  %v303_v8 = vsel %vm293_vm1, %v289_v2, 1326507024  ;;  %v298_v9 = vsel %vm290_vm2, %v277_v3, %v280_v5  ;;  %v294_v49 = vsel %vm290_vm2, %v274_v42, %v277_v3 }
  0xa0   : > { %v300_v10 = vsel %vm292_vm3, %v283_v6, %v299_v7  ;;  %v302_v11 = vsel %vm290_vm2, %v280_v5, %v283_v6  ;;  %v304_v13 = vsel %vm292_vm3, %v286_v1, %v303_v8  ;;  %v295_v38 = vsel %vm293_vm1, %v283_v6, 2102212464 }
  0xa1   : > { %v301_v12 = vsel %vm291_vm4, %v298_v9, %v300_v10  ;;  %v305_v15 = vsel %vm291_vm4, %v302_v11, %v304_v13  ;;  %v296_v51 = vsel %vm292_vm3, %v280_v5, %v295_v38 }
  0xa2   : > { %v331_v17 = vand.u32 65535, %v301_v12  ;;  %v332_v19 = vshrl.u32 %v301_v12, 16  ;;  %v309_v20 = vand.u32 65535, %v305_v15  ;;  %v310_v21 = vshrl.u32 %v305_v15, 16 }
  0xa3   : > { %v297_v50 = vsel %vm291_vm4, %v294_v49, %v296_v51  ;;  %vm401_vm4 = vweird.f32 %v1048_v18 }
  0xa4   : > { %v334_v22 = vmul.u32 %v332_v19, %v307_v14  ;;  %v335_v23 = vmul.u32 %v331_v17, %v308_v16  ;;  %v312_v24 = vmul.u32 %v310_v21, %v307_v14  ;;  %v313_v25 = vmul.u32 %v309_v20, %v308_v16 }
  0xa5   : > { %v333_v26 = vmul.u32 %v331_v17, %v307_v14  ;;  %v311_v28 = vmul.u32 %v309_v20, %v307_v14  ;;  %v336_v31 = vmul.u32 %v332_v19, %v308_v16  ;;  %v314_v32 = vmul.u32 %v310_v21, %v308_v16 }
  0xa6   : > { %v337_v27 = vshll.u32 %v334_v22, 16  ;;  %v315_v29 = vshll.u32 %v312_v24, 16  ;;  %v339_v33 = vshll.u32 %v335_v23, 16  ;;  %v317_v35 = vshll.u32 %v313_v25, 16 }
  0xa7   : > { %v338_v47 = vshrl.u32 %v334_v22, 16  ;;  %v316_v52 = vshrl.u32 %v312_v24, 16  ;;  %v340_v54 = vshrl.u32 %v335_v23, 16  ;;  %v318_v56 = vshrl.u32 %v313_v25, 16 }
  0xa8   : > { %vm341_vm5 = vc.u32 %v333_v26, %v337_v27  ;;  %v343_v34 = vadd.s32 %v337_v27, %v333_v26  ;;  %vm319_vm6 = vc.u32 %v311_v28, %v315_v29  ;;  %v321_v36 = vadd.s32 %v315_v29, %v311_v28 }
  0xa9   : > { %v342_v37 = vsel %vm341_vm5, 1, %v907_v0  ;;  %v320_v39 = vsel %vm319_vm6, 1, %v907_v0  ;;  %v351_v60 = vmul.u32 %v1118_v4, %v297_v50  ;;  %v666_v50 = vld [vmem:[%s1216_s4 + $0x18] sm:$0xff] }
  0xaa   : > { %v344_v40 = vadd.s32 %v342_v37, %v336_v31  ;;  %vm345_vm7 = vc.u32 %v343_v34, %v339_v33  ;;  %v322_v43 = vadd.s32 %v320_v39, %v314_v32  ;;  %vm323_vm8 = vc.u32 %v321_v36, %v317_v35  ;;  %687 = vmatpush.msra.mxu2 %v666_v50 }
  0xab   : > { %v346_v44 = vsel %vm345_vm7, 1, %v907_v0  ;;  %v324_v46 = vsel %vm323_vm8, 1, %v907_v0  ;;  %v347_v0 = vadd.s32 %v343_v34, %v339_v33 }
  0xac   : > { %v348_v48 = vadd.s32 %v346_v44, %v344_v40  ;;  %v326_v53 = vadd.s32 %v324_v46, %v322_v43 }
  0xae   : > { %v349_v55 = vadd.s32 %v348_v48, %v338_v47  ;;  %v327_v41 = vadd.s32 %v326_v53, %v316_v52 }
  0xb0   : > { %v350_v57 = vadd.s32 %v349_v55, %v340_v54  ;;  %v328_v58 = vadd.s32 %v327_v41, %v318_v56  ;;  %v837_v41 = vld [vmem:[%s1215_s3] ss:$0 sm:$0xff] }
  0xb2   : > { %v354_v59 = vadd.s32 1, %v350_v57  ;;  %vm353_vm9 = vc.u32 %v328_v58, %v347_v0  ;;  %v352_v9 = vadd.s32 %v347_v0, %v328_v58  ;;  %v664_v0 = vld [vmem:[%s1216_s4 + $0x8] sm:$0xff] }
  0xb4   : > { %v355_v61 = vsel %vm353_vm9, %v354_v59, %v350_v57  ;;  %vm671_vm9 = vcmask 261120  }
  0xb5   : > { %v356_v62 = vadd.s32 %v355_v61, %v351_v60  ;;  %v663_v60 = vld [vmem:[%s1216_s4] sm:$0xff] }
  0xb7   : > { %v357_v63 = vadd.s32 536870912, %v356_v62 }
  0xb9   : > { %v358_v1 = vshrl.u32 %v357_v63, 30 }
  0xbb   : > { %v359_v2 = vshll.u32 %v358_v1, 30  ;;  %v382_v23 = vsub.s32 4, %v358_v1 }
  0xbd   : > { %v360_v3 = vsub.s32 %v356_v62, %v359_v2  ;;  %v383_v28 = vsel %vm260_vm12, %v382_v23, %v358_v1 }
  0xbe   : > { %v385_v32 = vsel %vm259_vm13, 0, %v383_v28 }
  0xbf   : > { %vm361_vm10 = vcmp.lt.s32.totalorder %v360_v3, 0  ;;  %v362_v5 = vsub.s32 0, %v360_v3  ;;  %v556_v37 = vadd.s32 3, %v385_v32  ;;  %v402_v42 = vand.u32 3, %v385_v32 }
  0xc1   : > { %v363_v6 = vsel %vm361_vm10, %v362_v5, %v360_v3  ;;  %v557_v43 = vand.u32 3, %v556_v37  ;;  %vm403_vm14 = vcmp.lt.s32.totalorder %v402_v42, 2  ;;  %vm404_vm15 = vcmp.eq.s32.totalorder %v402_v42, 0 }
  0xc2   : > { %v364_v7 = vclz %v363_v6  ;;  %vm407_vm0 = vcmp.eq.s32.totalorder %v402_v42, 2 }
  0xc3   : > { %vm558_vm1 = vcmp.lt.s32.totalorder %v557_v43, 2  ;;  %vm559_vm2 = vcmp.eq.s32.totalorder %v557_v43, 0  ;;  %vm562_vm3 = vcmp.eq.s32.totalorder %v557_v43, 2 }
  0xc4   : > { %v778_v8 = vadd.s32 4294967294, %v364_v7 }
  0xc6   : > { %vm779_vm11 = vcmp.lt.s32.totalorder %v778_v8, 0 }
  0xc7   : > { %v367_v45 = vsel %vm779_vm11, 0, %v778_v8 }
  0xc8   : > { %v368_v10 = vsub.s32 32, %v367_v45  ;;  %v372_v11 = vsub.s32 4294967266, %v367_v45  ;;  %v369_v12 = vshll.u32 %v360_v3, %v367_v45 }
  0xca   : > { %v370_v13 = vshrl.u32 %v352_v9, %v368_v10  ;;  %v373_v4 = vadd.s32 127, %v372_v11 }
  0xcc   : > { %v371_v14 = vor.u32 %v370_v13, %v369_v12  ;;  %v374_v15 = vshll.u32 %v373_v4, 23  ;;  %v838_v13 = vld [vmem:[%s1217_s5] ss:$0 sm:$0xff] }
  0xce   : > { %v375_v16 = vor.u32 4788187, %v374_v15  ;;  %v378_v19 = vcvt.s32.f32 %v371_v14 }
  0xd0   : > { %v376_v17 = vand.u32 2147483647, %v375_v16 }
  0xd2   : > { %v379_v20 = vmul.f32 %v378_v19, %v376_v17 }
  0xd4   : > { %v380_v21 = vxor.u32 2147483648, %v379_v20 }
  0xd6   : > { %v381_v22 = vsel %vm260_vm12, %v380_v21, %v379_v20 }
  0xd7   : > { %v384_v24 = vsel %vm259_vm13, %v1048_v18, %v381_v22  ;;  %v665_v18 = vld [vmem:[%s1216_s4 + $0x10] sm:$0xff] }
  0xd8   : > { %v386_v25 = vmul.f32 %v384_v24, %v384_v24  ;;  %688 = vmatpush.msra.mxu2 %v665_v18 }
  0xda   : > { %v387_v26 = vmul.f32 -0.001358992, %v386_v25  ;;  %v394_v27 = vmul.f32 -0.00019511016, %v386_v25  ;;  %689 = vmatpush.msra.mxu2 %v664_v0 }
  0xdc   : > { %v388_v29 = vadd.f32 0.041655596, %v387_v26  ;;  %v395_v31 = vadd.f32 0.008332121, %v394_v27  ;;  %690 = vmatpush.msra.mxu2 %v663_v60 }
  0xde   : > { %v389_v33 = vmul.f32 %v388_v29, %v386_v25  ;;  %v396_v34 = vmul.f32 %v395_v31, %v386_v25 }
  0xe0   : > { %v390_v35 = vadd.f32 -0.4999988, %v389_v33  ;;  %v397_v36 = vadd.f32 -0.16666654, %v396_v34 }
  0xe2   : > { %v391_v38 = vmul.f32 %v390_v35, %v386_v25  ;;  %v398_v39 = vmul.f32 %v397_v36, %v386_v25 }
  0xe4   : > { %v392_v40 = vadd.f32 1.0, %v391_v38  ;;  %v399_v30 = vadd.f32 1.0, %v398_v39 }
  0xe6   : > { %v400_v44 = vmul.f32 %v399_v30, %v384_v24  ;;  %v408_v46 = vxor.u32 2147483648, %v392_v40 }
  0xe8   : > { %v405_v47 = vxor.u32 2147483648, %v400_v44  ;;  %v409_v49 = vsel %vm407_vm0, %v408_v46, %v400_v44  ;;  %v564_v52 = vsel %vm562_vm3, %v408_v46, %v400_v44 }
  0xea   : > { %v406_v48 = vsel %vm404_vm15, %v392_v40, %v405_v47  ;;  %v561_v51 = vsel %vm559_vm2, %v392_v40, %v405_v47 }
  0xeb   : > { %v410_v53 = vsel %vm403_vm14, %v406_v48, %v409_v49  ;;  %v565_v54 = vsel %vm558_vm1, %v561_v51, %v564_v52 }
  0xec   : > { %v411_v55 = vsel %vm401_vm4, nan, %v410_v53  ;;  %v566_v56 = vsel %vm401_vm4, nan, %v565_v54 }
  0xed   : > { %619 = vmatmul.f32.vlgmr.msra.gmra.mxu0 %v411_v55  ;;  %639 = vmatmul.f32.vlgmr.msra.gmra.mxu1 %v566_v56 }
 0x16a   : > { %v620_v57 = vpop.f32.mrf.mxu0  ;;  %v640_v59 = vpop.f32.mrf.mxu1 }
 0x16b   : > { %v621_v58 = vadd.f32 %v837_v41, %v620_v57 }
 0x16d   : > { %v641_v61 = vadd.f32 %v640_v59, %v621_v58 }
 0x16f   : > { %v783_v62 = vmul.f32 -1.442695, %v641_v61 }
 0x171   : > { %839 = vpow2.f32 %v783_v62 }
 0x177   : > { %v840_v63 = vpop.eup %839 }
 0x178   : > { %v646_v1 = vadd.f32 1.0, %v840_v63 }
 0x17a   : > { %841 = vrcp.f32 %v646_v1  ;;  %v658_v6 = vand.u32 2147483648, %v646_v1  ;;  %v656_v8 = vand.u32 2147483647, %v646_v1  ;;  %vm652_vm6 = vweird.f32 %v646_v1 }
 0x17c   : > { %v659_v9 = vor.u32 1.1754944e-38, %v658_v6  ;;  %vm657_vm8 = vcmp.eq.f32.partialorder %v656_v8, 8.507059e+37 }
 0x180   : > { %v842_v2 = vpop.eup %841 }
 0x181   : > { %v648_v3 = vmul.f32 %v842_v2, %v646_v1  ;;  %vm653_vm5 = vweird.f32 %v842_v2 }
 0x182   : > { %vm654_vm7 = vmor %vm652_vm6, %vm653_vm5 }
 0x183   : > { %v649_v5 = vsub.f32 1.0, %v648_v3 }
 0x185   : > { %v650_v7 = vmul.f32 %v842_v2, %v649_v5 }
 0x187   : > { %v651_v45 = vadd.f32 %v842_v2, %v650_v7 }
 0x189   : > { %v655_v10 = vsel %vm654_vm7, %v842_v2, %v651_v45 }
 0x18a   : > { %v660_v11 = vsel %vm657_vm8, %v659_v9, %v655_v10 }
 0x18b   : > { %v662_v12 = vmul.f32 %v660_v11, %v641_v61 }
 0x18d   : > { %784 = vmatmul.msk.f32.vlgmr.msra.gmra.mxu2 %vm671_vm9, %v662_v12 }
 0x210   : > { %v692_v4 = vpop.f32.mrf.mxu2 }
 0x211   : > { %v693_v14 = vadd.f32 %v838_v13, %v692_v4 }
 0x213   : > { %695 = vst.msk [vmem:[%s242_s29] sm:$0xff] %vm671_vm9, %v693_v14 }
 0x214   : > { %870 = shalt.err (!%p867_p3)
}
 0x215   : > { %789 = dma.vmem_to_hbm [thread:$0]  (%p987_p5), %s710_s9, 128, %s712_s10, %s697_s11  }
 0x216 PF: > { %p795_p4 = scmp.ge.s32.totalorder %s905_s24, 2  ;;  %s723_s15 = sand.u32 1, %s893_s21  }
 0x217   : > { %s724_s19 = scalar_lea.sflag [#allocation3], %s723_s15 }
 0x218   : > { %p792_p7 = pnand %p795_p4, %p991_p6 }
 0x21a   : > { %p793_p8 = pneg %p792_p7 }
 0x21c   : > { %888 = dma.done.wait (%p793_p8), %s724_s19, 128  }
 0x21d   : > { %890 = vsyncadd (%p793_p8), %s724_s19, 4294967168  ;;  %p16_p9 = scmp.ge.s32.totalorder %s974_s27, 4   ;;  %s1221_s21 = smov %s897_s22 }
 0x21e   : > { %s1222_s22 = smov %s901_s23  ;;  %s1223_s23 = smov %s985_s30 }
 0x21f   : > { %s1224_s24 = smov %s974_s27  ;;  %18 = sbr.rel (!%p16_p9) target bundleno = 3 (0x3), region = 79 }
 0x224   :  { %730 = vsyncpa [#allocation3], 1 }
 0x225   :  { %732 = vsyncpa [#allocation3 + $0x1], 1 }

</bundles_post_ra>
